<compile_context>
chip_gen: v6e
topology: v6e:2x2x1
jax: 0.10.0
libtpu: 0.0.40
codegen_flags: <defaults>
</compile_context>

<pallas_src>
import jax
import jax.numpy as jnp
from jax.experimental import pallas as pl
from jax.experimental.pallas import tpu as pltpu

CIN = 3
COUT = 80            # 64 (conv1) + 16 (conv2) channels after torch.cat
COUT_PAD = 128       # channel axis padded to one full lane tile
POOLED = 9           # (16 + 2*1) // 2
P = POOLED * POOLED  # 81 pooled spatial positions
S_PAD = 128          # pooled spatial padded to full 128-lane width


def conv_pool_kernel(xg_ref, wb_ref, o_ref):
    """Fused [conv1|conv2] 1x1 conv + 2x2 max-pool for one sample (pure VPU).

    xg_ref: (1, 12, 128)  row j = tap*3 + cin; lanes = pooled spatial (81 valid)
    wb_ref: (128, 4)      cols 0..2 = fused conv weight^T (cout, cin), col 3 = bias
    o_ref : (1, 128, 128) (channel, pooled spatial) -- already NCHW flatten order
    """
    x = xg_ref[0]                      # (12, 128) -- 2 vregs, loaded once
    w0 = wb_ref[:, 0:1]                # (128, 1) weight column for cin=0
    w1 = wb_ref[:, 1:2]
    w2 = wb_ref[:, 2:3]
    b = wb_ref[:, 3:4]                 # (128, 1) fused bias column

    def tap(k):
        j = 3 * k
        # (128,1) * (1,128) -> (128,128): three broadcast FMAs per tap, no MXU.
        return (w0 * x[j + 0:j + 1, :]
                + w1 * x[j + 1:j + 2, :]
                + w2 * x[j + 2:j + 3, :])

    r = tap(0)
    for k in range(1, 4):              # 2x2 max-pool over the 4 window taps
        r = jnp.maximum(r, tap(k))
    # per-channel bias commutes with the max: max_k(a_k) + b == max_k(a_k + b)
    o_ref[0] = r + b


def model_forward(x_nchw, wb):
    """x_nchw: (N, 3, 16, 16) float32 -> (N, 80*9*9) float32."""
    N, C, H, W = x_nchw.shape
    assert C == CIN and H == 16 and W == 16

    # ---- pool-tap gather (pure indexing on ~6 KB): pad -> split (h, w) into
    # (pooled, tap) -> (N, tap*cin, pooled) -> pad spatial lanes 81 -> 128 ----
    x_pad = jnp.pad(x_nchw, ((0, 0), (0, 0), (1, 1), (1, 1)))           # (N,3,18,18)
    xg = x_pad.reshape(N, C, POOLED, 2, POOLED, 2)                      # ci,ph,dh,pw,dw
    xg = jnp.transpose(xg, (0, 3, 5, 1, 2, 4)).reshape(N, 4 * C, P)     # (N,12,81)
    xg = jnp.pad(xg, ((0, 0), (0, 0), (0, S_PAD - P)))                  # (N,12,128)

    out = pl.pallas_call(
        conv_pool_kernel,
        out_shape=jax.ShapeDtypeStruct((N, COUT_PAD, S_PAD), jnp.float32),
        grid=(N,),
        in_specs=[
            pl.BlockSpec((1, 4 * C, S_PAD), lambda n: (n, 0, 0)),
            pl.BlockSpec((COUT_PAD, 4), lambda n: (0, 0)),
        ],
        out_specs=pl.BlockSpec((1, COUT_PAD, S_PAD), lambda n: (n, 0, 0)),
        compiler_params=pltpu.CompilerParams(
            dimension_semantics=("parallel",)),
    )(xg, wb)

    # drop channel / spatial padding; data is already in NCHW flatten order
    return out[:, :COUT, :P].reshape(N, COUT * P)


def init_params(key):
    """Deterministic params matching the conv shapes; fused + lane-padded."""
    k1, k2, k3, k4 = jax.random.split(key, 4)
    bound = 1.0 / jnp.sqrt(float(CIN))
    w1 = jax.random.uniform(k1, (CIN, 64), jnp.float32, -bound, bound)   # conv1
    b1 = jax.random.uniform(k2, (64,), jnp.float32, -bound, bound)
    w2 = jax.random.uniform(k3, (CIN, 16), jnp.float32, -bound, bound)   # conv2
    b2 = jax.random.uniform(k4, (16,), jnp.float32, -bound, bound)
    w_fused = jnp.concatenate([w1, w2], axis=1)                          # (3, 80)
    b_fused = jnp.concatenate([b1, b2], axis=0)                          # (80,)
    # pack [W^T | b] into one lane-padded (128, 4) array for the kernel
    wb = jnp.zeros((COUT_PAD, 4), jnp.float32)
    wb = wb.at[:COUT, :CIN].set(w_fused.T)
    wb = wb.at[:COUT, 3].set(b_fused)
    return wb, w_fused, b_fused


def reference_forward(x_nchw, w_fused, b_fused):
    """Pure-JAX reference of the PyTorch forward (conv+pool+cat+flatten)."""
    N = x_nchw.shape[0]
    x_pad = jnp.pad(x_nchw, ((0, 0), (0, 0), (1, 1), (1, 1)))            # (N,3,18,18)
    conv = jnp.einsum("nchw,cd->ndhw", x_pad, w_fused) + b_fused[None, :, None, None]
    pooled = conv.reshape(N, COUT, POOLED, 2, POOLED, 2).max(axis=(3, 5))
    return pooled.reshape(N, COUT * P)


if __name__ == "__main__":
    key = jax.random.PRNGKey(0)
    kx, kp = jax.random.split(key)
    x = jax.random.normal(kx, (2, 3, 16, 16), dtype=jnp.float32)          # NCHW input
    wb, w_fused, b_fused = init_params(kp)

    y = jax.jit(model_forward)(x, wb)
    jax.block_until_ready(y)
    assert y.shape == (2, COUT * P), y.shape

    y_ref = reference_forward(x, w_fused, b_fused)
    err = float(jnp.max(jnp.abs(y - y_ref)))
    assert jnp.allclose(y, y_ref, atol=1e-4, rtol=1e-4), err

    print("KERNEL_OK")
</pallas_src>

<mosaic_0001>
module attributes {stable_mosaic.version = 11 : i64} {
  func.func @conv_pool_kernel(%arg0: i32, %arg1: memref<1x12x128xf32, #tpu.memory_space<vmem>>, %arg2: memref<128x4xf32, #tpu.memory_space<vmem>>, %arg3: memref<1x128x128xf32, #tpu.memory_space<vmem>>) attributes {dimension_semantics = [#tpu.dimension_semantics<parallel>], iteration_bounds = array<i64: 2>, scalar_prefetch = 0 : i64, scratch_operands = 0 : i64, tpu.core_type = #tpu.core_type<tc>, window_params = [{transform_indices = @transform_0, window_bounds = array<i64: 1, 12, 128>}, {pipeline_mode = #tpu.pipeline_mode<synchronous>, transform_indices = @transform_1, window_bounds = array<i64: 128, 4>}, {transform_indices = @transform_2, window_bounds = array<i64: 1, 128, 128>}]} {
    %c0 = arith.constant 0 : index
    %c0_0 = arith.constant 0 : index
    %c0_1 = arith.constant 0 : index
    %0 = vector.load %arg1[%c0, %c0_0, %c0_1] : memref<1x12x128xf32, #tpu.memory_space<vmem>>, vector<1x12x128xf32>
    %1 = vector.shape_cast %0 : vector<1x12x128xf32> to vector<12x128xf32>
    %c0_2 = arith.constant 0 : index
    %c0_3 = arith.constant 0 : index
    %2 = vector.load %arg2[%c0_2, %c0_3] : memref<128x4xf32, #tpu.memory_space<vmem>>, vector<128x1xf32>
    %c0_4 = arith.constant 0 : index
    %c1 = arith.constant 1 : index
    %3 = vector.load %arg2[%c0_4, %c1] : memref<128x4xf32, #tpu.memory_space<vmem>>, vector<128x1xf32>
    %c0_5 = arith.constant 0 : index
    %c2 = arith.constant 2 : index
    %4 = vector.load %arg2[%c0_5, %c2] : memref<128x4xf32, #tpu.memory_space<vmem>>, vector<128x1xf32>
    %c0_6 = arith.constant 0 : index
    %c3 = arith.constant 3 : index
    %5 = vector.load %arg2[%c0_6, %c3] : memref<128x4xf32, #tpu.memory_space<vmem>>, vector<128x1xf32>
    %6 = vector.extract_strided_slice %1 {offsets = [0, 0], sizes = [1, 128], strides = [1, 1]} : vector<12x128xf32> to vector<1x128xf32>
    %7 = vector.broadcast %2 : vector<128x1xf32> to vector<128x128xf32>
    %8 = vector.broadcast %6 : vector<1x128xf32> to vector<128x128xf32>
    %9 = arith.mulf %7, %8 : vector<128x128xf32>
    %10 = vector.extract_strided_slice %1 {offsets = [1, 0], sizes = [1, 128], strides = [1, 1]} : vector<12x128xf32> to vector<1x128xf32>
    %11 = vector.broadcast %3 : vector<128x1xf32> to vector<128x128xf32>
    %12 = vector.broadcast %10 : vector<1x128xf32> to vector<128x128xf32>
    %13 = arith.mulf %11, %12 : vector<128x128xf32>
    %14 = arith.addf %9, %13 : vector<128x128xf32>
    %15 = vector.extract_strided_slice %1 {offsets = [2, 0], sizes = [1, 128], strides = [1, 1]} : vector<12x128xf32> to vector<1x128xf32>
    %16 = vector.broadcast %4 : vector<128x1xf32> to vector<128x128xf32>
    %17 = vector.broadcast %15 : vector<1x128xf32> to vector<128x128xf32>
    %18 = arith.mulf %16, %17 : vector<128x128xf32>
    %19 = arith.addf %14, %18 : vector<128x128xf32>
    %20 = vector.extract_strided_slice %1 {offsets = [3, 0], sizes = [1, 128], strides = [1, 1]} : vector<12x128xf32> to vector<1x128xf32>
    %21 = vector.broadcast %2 : vector<128x1xf32> to vector<128x128xf32>
    %22 = vector.broadcast %20 : vector<1x128xf32> to vector<128x128xf32>
    %23 = arith.mulf %21, %22 : vector<128x128xf32>
    %24 = vector.extract_strided_slice %1 {offsets = [4, 0], sizes = [1, 128], strides = [1, 1]} : vector<12x128xf32> to vector<1x128xf32>
    %25 = vector.broadcast %3 : vector<128x1xf32> to vector<128x128xf32>
    %26 = vector.broadcast %24 : vector<1x128xf32> to vector<128x128xf32>
    %27 = arith.mulf %25, %26 : vector<128x128xf32>
    %28 = arith.addf %23, %27 : vector<128x128xf32>
    %29 = vector.extract_strided_slice %1 {offsets = [5, 0], sizes = [1, 128], strides = [1, 1]} : vector<12x128xf32> to vector<1x128xf32>
    %30 = vector.broadcast %4 : vector<128x1xf32> to vector<128x128xf32>
    %31 = vector.broadcast %29 : vector<1x128xf32> to vector<128x128xf32>
    %32 = arith.mulf %30, %31 : vector<128x128xf32>
    %33 = arith.addf %28, %32 : vector<128x128xf32>
    %34 = arith.maximumf %19, %33 : vector<128x128xf32>
    %35 = vector.extract_strided_slice %1 {offsets = [6, 0], sizes = [1, 128], strides = [1, 1]} : vector<12x128xf32> to vector<1x128xf32>
    %36 = vector.broadcast %2 : vector<128x1xf32> to vector<128x128xf32>
    %37 = vector.broadcast %35 : vector<1x128xf32> to vector<128x128xf32>
    %38 = arith.mulf %36, %37 : vector<128x128xf32>
    %39 = vector.extract_strided_slice %1 {offsets = [7, 0], sizes = [1, 128], strides = [1, 1]} : vector<12x128xf32> to vector<1x128xf32>
    %40 = vector.broadcast %3 : vector<128x1xf32> to vector<128x128xf32>
    %41 = vector.broadcast %39 : vector<1x128xf32> to vector<128x128xf32>
    %42 = arith.mulf %40, %41 : vector<128x128xf32>
    %43 = arith.addf %38, %42 : vector<128x128xf32>
    %44 = vector.extract_strided_slice %1 {offsets = [8, 0], sizes = [1, 128], strides = [1, 1]} : vector<12x128xf32> to vector<1x128xf32>
    %45 = vector.broadcast %4 : vector<128x1xf32> to vector<128x128xf32>
    %46 = vector.broadcast %44 : vector<1x128xf32> to vector<128x128xf32>
    %47 = arith.mulf %45, %46 : vector<128x128xf32>
    %48 = arith.addf %43, %47 : vector<128x128xf32>
    %49 = arith.maximumf %34, %48 : vector<128x128xf32>
    %50 = vector.extract_strided_slice %1 {offsets = [9, 0], sizes = [1, 128], strides = [1, 1]} : vector<12x128xf32> to vector<1x128xf32>
    %51 = vector.broadcast %2 : vector<128x1xf32> to vector<128x128xf32>
    %52 = vector.broadcast %50 : vector<1x128xf32> to vector<128x128xf32>
    %53 = arith.mulf %51, %52 : vector<128x128xf32>
    %54 = vector.extract_strided_slice %1 {offsets = [10, 0], sizes = [1, 128], strides = [1, 1]} : vector<12x128xf32> to vector<1x128xf32>
    %55 = vector.broadcast %3 : vector<128x1xf32> to vector<128x128xf32>
    %56 = vector.broadcast %54 : vector<1x128xf32> to vector<128x128xf32>
    %57 = arith.mulf %55, %56 : vector<128x128xf32>
    %58 = arith.addf %53, %57 : vector<128x128xf32>
    %59 = vector.extract_strided_slice %1 {offsets = [11, 0], sizes = [1, 128], strides = [1, 1]} : vector<12x128xf32> to vector<1x128xf32>
    %60 = vector.broadcast %4 : vector<128x1xf32> to vector<128x128xf32>
    %61 = vector.broadcast %59 : vector<1x128xf32> to vector<128x128xf32>
    %62 = arith.mulf %60, %61 : vector<128x128xf32>
    %63 = arith.addf %58, %62 : vector<128x128xf32>
    %64 = arith.maximumf %49, %63 : vector<128x128xf32>
    %65 = vector.broadcast %5 : vector<128x1xf32> to vector<128x128xf32>
    %66 = arith.addf %64, %65 : vector<128x128xf32>
    %c0_7 = arith.constant 0 : index
    %c0_8 = arith.constant 0 : index
    %c0_9 = arith.constant 0 : index
    %67 = vector.load %arg3[%c0_7, %c0_8, %c0_9] : memref<1x128x128xf32, #tpu.memory_space<vmem>>, vector<1x128x128xf32>
    %68 = vector.shape_cast %67 : vector<1x128x128xf32> to vector<128x128xf32>
    %69 = vector.shape_cast %66 : vector<128x128xf32> to vector<1x128x128xf32>
    tpu.vector_store %arg3[%c0_7, %c0_8, %c0_9], %69 {strides = array<i32>} : memref<1x128x128xf32, #tpu.memory_space<vmem>>, vector<1x128x128xf32>,
    return
  }
  func.func @transform_0(%arg0: i32) -> (i32, i32, i32) {
    %c0_i32 = arith.constant 0 : i32
    %c0_i32_0 = arith.constant 0 : i32
    %c0_i32_1 = arith.constant 0 : i32
    return %arg0, %c0_i32, %c0_i32_0 : i32, i32, i32
  }
  func.func @transform_1(%arg0: i32) -> (i32, i32) {
    %c0_i32 = arith.constant 0 : i32
    %c0_i32_0 = arith.constant 0 : i32
    %c0_i32_1 = arith.constant 0 : i32
    return %c0_i32, %c0_i32_0 : i32, i32
  }
  func.func @transform_2(%arg0: i32) -> (i32, i32, i32) {
    %c0_i32 = arith.constant 0 : i32
    %c0_i32_0 = arith.constant 0 : i32
    %c0_i32_1 = arith.constant 0 : i32
    return %arg0, %c0_i32, %c0_i32_0 : i32, i32, i32
  }
}

</mosaic_0001>

<bundles_post_ra>
// kernel: model_forward.1
= control target key start
LH: loop header
LB: loop body
LE: loop exit
PB: predicated region body
PF: predicated region fallthrough
CT: control target
= control target key end

     0   :  { %s997_s9 = smov 0   ;;  %s1940_s0 = inlined_call_operand.vmem [shape: f32[2,12,128], index: 0, kind: input, shape index: {}]   ;;  %s1941_s1 = inlined_call_operand.vmem [shape: f32[128,4], index: 1, kind: input, shape index: {}]   ;;  %s1942_s2 = inlined_call_operand.vmem [shape: f32[2,128,128], index: 2, kind: output, shape index: {}]  }
   0x1 LB: > { %s937_s10 = sadd.s32 4294967295, %s976_s9   ;;  %p941_p0 = scmp.ge.s32.totalorder %s976_s9, 1  ;;  %s976_s9 = sphi %s997_s9, %s12_s9  }
   0x2   : > { %p112_p1 = scmp.lt.s32.totalorder %s976_s9, 3 }
   0x4   : > { %p113_p2 = pnand %p941_p0, %p112_p1 }
   0x6   : > { %116 = sbr.rel (%p113_p2) target bundleno = 271 (0x10f), region = 28 }
   0xb   : > { %v1008_v0 = vld [vmem:[%s1941_s1 + $0x10] sm:$0xff]  ;;  %v1013_v1 = vld [vmem:[%s1941_s1] sm:$0xff]  ;;  %v978_v2 = vmov 0   ;;  %v1020_v3 = vld [vmem:[%s1941_s1 + $0x18] sm:$0xff]  ;;  %v979_v17 = vmov 1   ;;  %v980_v18 = vmov 2   ;;  %v242_v28 = vlaneseq }
   0xc   : > { %963 = vset.pattern.permute.xlu1 %v978_v2  ;;  %962 = vset.pattern.permute.xlu0 %v978_v2  ;;  %v1025_v4 = vld [vmem:[%s1941_s1 + $0x8] sm:$0xff]  ;;  %v1037_v6 = vld [vmem:[%s1941_s1 + $0x20] sm:$0xff]  ;;  %v1044_v7 = vld [vmem:[%s1941_s1 + $0x38] sm:$0xff]  ;;  %v981_v19 = vmov 3   ;;  %p134_p3 = scmp.lt.s32.totalorder %s937_s10, 1 }
   0xd   : > { %174 = vperm.xlu1 %963, %v1008_v0   ;;  %164 = vperm.xlu0 %962, %v1013_v1   ;;  %v1032_v5 = vld [vmem:[%s1941_s1 + $0x28] sm:$0xff]  ;;  %v1049_v8 = vld [vmem:[%s1941_s1 + $0x30] sm:$0xff]  ;;  %v1061_v10 = vld [vmem:[%s1941_s1 + $0x40] sm:$0xff]  ;;  %v243_v31 = vshrl.u32 %v242_v28, 7 }
   0xe   : > { %v1056_v9 = vld [vmem:[%s1941_s1 + $0x48] sm:$0xff]  ;;  %v157_v11 = vld [vmem:[%s1941_s1 + $0x58] sm:$0xff]  ;;  %v1071_v12 = vld [vmem:[%s1941_s1 + $0x50] sm:$0xff]  ;;  %s2084_s10 = smov (!%p134_p3, %s937_s10), 1 }
   0xf   : > { %v159_v13 = vld [vmem:[%s1941_s1 + $0x68] sm:$0xff]  ;;  %v1080_v14 = vld [vmem:[%s1941_s1 + $0x60] sm:$0xff]  ;;  %v161_v15 = vld [vmem:[%s1941_s1 + $0x78] sm:$0xff]  ;;  %s948_s17 = sshll.u32 %s2084_s10, 4  ;;  %v244_v34 = vsub.s32 0, %v243_v31  ;;  %v328_v35 = vsub.s32 1, %v243_v31 }
  0x10   : > { %v1089_v16 = vld [vmem:[%s1941_s1 + $0x70] sm:$0xff]  ;;  %s138_s20 = scalar_lea.vmem %s1940_s0, %s948_s17  ;;  %v464_v36 = vsub.s32 3, %v243_v31  ;;  %v572_v37 = vsub.s32 6, %v243_v31  ;;  %v428_v42 = vsub.s32 2, %v243_v31  ;;  %v484_v43 = vsub.s32 4, %v243_v31  ;;  %s949_s21 = sshll.u32 %s2084_s10, 7 }
  0x11   : > { %179 = vperm.xlu1 %963, %v1020_v3   ;;  %169 = vperm.xlu0 %962, %v1025_v4   ;;  %v144_v38 = vld [vmem:[%s138_s20] sm:$0xff]  ;;  %v145_v39 = vld [vmem:[%s138_s20 + $0x8] sm:$0xf]  ;;  %v592_v44 = vsub.s32 7, %v243_v31  ;;  %v520_v45 = vsub.s32 5, %v243_v31  ;;  %s1801_s23 = scalar_lea.vmem %s1942_s2, %s949_s21 }
  0x12   : > { %v1159_v46 = vrot.slane %v144_v38, %v244_v34  ;;  %v1161_v47 = vrot.slane %v144_v38, %v464_v36  ;;  %v1163_v48 = vrot.slane %v144_v38, %v572_v37  ;;  %v1165_v49 = vrot.slane %v145_v39, %v328_v35 }
  0x13   : > { %v1171_v52 = vrot.slane %v144_v38, %v328_v35  ;;  %v1173_v53 = vrot.slane %v144_v38, %v484_v43  ;;  %v1175_v54 = vrot.slane %v144_v38, %v592_v44  ;;  %v1177_v55 = vrot.slane %v145_v39, %v428_v42 }
  0x14   : > { %1953 = vst [vmem:[#allocation2_spill] sm:$0xff] %v1163_v48  ;;  %1954 = vst [vmem:[#allocation3_spill] sm:$0xff] %v1165_v49  ;;  %v1179_v56 = vrot.slane %v144_v38, %v428_v42  ;;  %v1181_v57 = vrot.slane %v144_v38, %v520_v45  ;;  %v1183_v58 = vrot.slane %v145_v39, %v244_v34 }
  0x15   : > { %189 = vperm.xlu1 %963, %v1032_v5   ;;  %184 = vperm.xlu0 %962, %v1037_v6   ;;  %1956 = vst [vmem:[#allocation5_spill] sm:$0xff] %v1177_v55  ;;  %v1185_v59 = vrot.slane %v145_v39, %v464_v36 }
  0x16   : > { %1957 = vst [vmem:[#allocation6_spill] sm:$0xff] %v1179_v56  ;;  %1958 = vst [vmem:[#allocation7_spill] sm:$0xff] %v1181_v57 }
  0x17   : > { %1959 = vst [vmem:[#allocation8_spill] sm:$0xff] %v1183_v58  ;;  %1960 = vst [vmem:[#allocation9_spill] sm:$0xff] %v1185_v59 }
  0x19   : > { %199 = vperm.xlu1 %963, %v1044_v7   ;;  %194 = vperm.xlu0 %962, %v1049_v8  }
  0x1d   : > { %209 = vperm.xlu1 %963, %v1056_v9   ;;  %204 = vperm.xlu0 %962, %v1061_v10  }
  0x21   : > { %219 = vperm.xlu1 %963, %v157_v11   ;;  %214 = vperm.xlu0 %962, %v1071_v12  }
  0x25   : > { %229 = vperm.xlu1 %963, %v159_v13   ;;  %224 = vperm.xlu0 %962, %v1080_v14  }
  0x29   : > { %239 = vperm.xlu1 %963, %v161_v15   ;;  %234 = vperm.xlu0 %962, %v1089_v16  }
  0x2d   : > { %965 = vset.pattern.permute.xlu1 %v979_v17  ;;  %964 = vset.pattern.permute.xlu0 %v979_v17 }
  0x2e   : > { %267 = vperm.xlu1 %965, %v1025_v4   ;;  %263 = vperm.xlu0 %964, %v1013_v1  }
  0x32   : > { %271 = vperm.xlu1 %965, %v1008_v0   ;;  %275 = vperm.xlu0 %964, %v1020_v3  }
  0x36   : > { %279 = vperm.xlu1 %965, %v1037_v6   ;;  %283 = vperm.xlu0 %964, %v1032_v5  }
  0x3a   : > { %287 = vperm.xlu1 %965, %v1049_v8   ;;  %291 = vperm.xlu0 %964, %v1044_v7  }
  0x3e   : > { %295 = vperm.xlu1 %965, %v1061_v10   ;;  %299 = vperm.xlu0 %964, %v1056_v9  }
  0x42   : > { %303 = vperm.xlu1 %965, %v1071_v12   ;;  %307 = vperm.xlu0 %964, %v157_v11  }
  0x46   : > { %311 = vperm.xlu1 %965, %v1080_v14   ;;  %315 = vperm.xlu0 %964, %v159_v13  }
  0x4a   : > { %319 = vperm.xlu1 %965, %v1089_v16   ;;  %323 = vperm.xlu0 %964, %v161_v15  }
  0x4e   : > { %966 = vset.pattern.permute.xlu1 %v980_v18  ;;  %967 = vset.pattern.permute.xlu0 %v980_v18 }
  0x4f   : > { %363 = vperm.xlu1 %966, %v1013_v1   ;;  %367 = vperm.xlu0 %967, %v1025_v4  }
  0x53   : > { %371 = vperm.xlu1 %966, %v1008_v0   ;;  %379 = vperm.xlu0 %967, %v1037_v6  }
  0x57   : > { %375 = vperm.xlu1 %966, %v1020_v3   ;;  %387 = vperm.xlu0 %967, %v1049_v8  }
  0x5b   : > { %383 = vperm.xlu1 %966, %v1032_v5   ;;  %395 = vperm.xlu0 %967, %v1061_v10  }
  0x5f   : > { %391 = vperm.xlu1 %966, %v1044_v7   ;;  %403 = vperm.xlu0 %967, %v1071_v12  }
  0x63   : > { %399 = vperm.xlu1 %966, %v1056_v9   ;;  %411 = vperm.xlu0 %967, %v1080_v14  }
  0x67   : > { %407 = vperm.xlu1 %966, %v157_v11   ;;  %419 = vperm.xlu0 %967, %v1089_v16  }
  0x6b   : > { %415 = vperm.xlu1 %966, %v159_v13   ;;  %968 = vset.pattern.permute.xlu0 %v981_v19 }
  0x6c   : > { %787 = vperm.xlu0 %968, %v1013_v1  }
  0x6f   : > { %423 = vperm.xlu1 %966, %v161_v15  }
  0x70   : > { %799 = vperm.xlu0 %968, %v1020_v3  }
  0x73   : > { %969 = vset.pattern.permute.xlu1 %v981_v19 }
  0x74   : > { %791 = vperm.xlu1 %969, %v1025_v4   ;;  %807 = vperm.xlu0 %968, %v1032_v5  }
  0x78   : > { %795 = vperm.xlu1 %969, %v1008_v0   ;;  %815 = vperm.xlu0 %968, %v1044_v7  }
  0x7c   : > { %803 = vperm.xlu1 %969, %v1037_v6   ;;  %823 = vperm.xlu0 %968, %v1056_v9  }
  0x80   : > { %811 = vperm.xlu1 %969, %v1049_v8   ;;  %831 = vperm.xlu0 %968, %v157_v11  }
  0x84   : > { %819 = vperm.xlu1 %969, %v1061_v10   ;;  %839 = vperm.xlu0 %968, %v159_v13  }
  0x88   : > { %v175_v20 = vpop.permute.xlu1 %174  ;;  %827 = vperm.xlu1 %969, %v1071_v12   ;;  %847 = vperm.xlu0 %968, %v161_v15   ;;  %v165_v21 = vpop.permute.xlu0 %164 }
  0x89   : > { %v1188_v60 = vmul.f32 %v1159_v46, %v175_v20  ;;  %v1191_v61 = vmul.f32 %v1161_v47, %v175_v20  ;;  %v1194_v62 = vmul.f32 %v1163_v48, %v175_v20  ;;  %v1197_v63 = vmul.f32 %v1165_v49, %v175_v20 }
  0x8a   : > { %v1200_v0 = vmul.f32 %v1159_v46, %v165_v21  ;;  %v1203_v1 = vmul.f32 %v1161_v47, %v165_v21  ;;  %v1206_v2 = vmul.f32 %v1163_v48, %v165_v21  ;;  %v1209_v3 = vmul.f32 %v1165_v49, %v165_v21 }
  0x8c   : > { %v180_v22 = vpop.permute.xlu1 %179  ;;  %835 = vperm.xlu1 %969, %v1080_v14   ;;  %v170_v23 = vpop.permute.xlu0 %169 }
  0x8d   : > { %v1212_v4 = vmul.f32 %v1159_v46, %v180_v22  ;;  %v1215_v5 = vmul.f32 %v1161_v47, %v180_v22  ;;  %v1218_v6 = vmul.f32 %v1163_v48, %v180_v22  ;;  %v1221_v7 = vmul.f32 %v1165_v49, %v180_v22 }
  0x8e   : > { %v1224_v8 = vmul.f32 %v1159_v46, %v170_v23  ;;  %v1227_v9 = vmul.f32 %v1161_v47, %v170_v23  ;;  %v1230_v10 = vmul.f32 %v1163_v48, %v170_v23  ;;  %v1233_v11 = vmul.f32 %v1165_v49, %v170_v23 }
  0x90   : > { %v190_v24 = vpop.permute.xlu1 %189  ;;  %843 = vperm.xlu1 %969, %v1089_v16   ;;  %v1131_v25 = vpop.permute.xlu0 %184 }
  0x91   : > { %v1236_v14 = vmul.f32 %v1159_v46, %v190_v24  ;;  %v1239_v15 = vmul.f32 %v1161_v47, %v190_v24  ;;  %v1242_v16 = vmul.f32 %v1163_v48, %v190_v24  ;;  %v1245_v17 = vmul.f32 %v1165_v49, %v190_v24 }
  0x92   : > { %v1249_v18 = vmul.f32 %v1159_v46, %v1131_v25  ;;  %v1253_v19 = vmul.f32 %v1161_v47, %v1131_v25  ;;  %v1257_v20 = vmul.f32 %v1163_v48, %v1131_v25  ;;  %v1261_v21 = vmul.f32 %v1165_v49, %v1131_v25 }
  0x94   : > { %v1135_v26 = vpop.permute.xlu1 %199  ;;  %v1137_v27 = vpop.permute.xlu0 %194 }
  0x95   : > { %v1265_v22 = vmul.f32 %v1159_v46, %v1135_v26  ;;  %v1269_v23 = vmul.f32 %v1161_v47, %v1135_v26  ;;  %v1273_v24 = vmul.f32 %v1163_v48, %v1135_v26  ;;  %v1277_v28 = vmul.f32 %v1165_v49, %v1135_v26 }
  0x96   : > { %v1281_v25 = vmul.f32 %v1159_v46, %v1137_v27  ;;  %v1285_v31 = vmul.f32 %v1161_v47, %v1137_v27  ;;  %v1289_v34 = vmul.f32 %v1163_v48, %v1137_v27  ;;  %v1293_v35 = vmul.f32 %v1165_v49, %v1137_v27 }
  0x98   : > { %v1143_v29 = vpop.permute.xlu1 %209  ;;  %v1145_v30 = vpop.permute.xlu0 %204 }
  0x99   : > { %v1297_v26 = vmul.f32 %v1159_v46, %v1143_v29  ;;  %v1301_v38 = vmul.f32 %v1161_v47, %v1143_v29  ;;  %v1305_v39 = vmul.f32 %v1163_v48, %v1143_v29  ;;  %v1309_v42 = vmul.f32 %v1165_v49, %v1143_v29 }
  0x9a   : > { %v1313_v27 = vmul.f32 %v1159_v46, %v1145_v30  ;;  %v1317_v43 = vmul.f32 %v1161_v47, %v1145_v30  ;;  %v1321_v44 = vmul.f32 %v1163_v48, %v1145_v30  ;;  %v1325_v45 = vmul.f32 %v1165_v49, %v1145_v30 }
  0x9b   : > { %1961 = vst [vmem:[#allocation10_spill] sm:$0xff] %v1297_v26  ;;  %1962 = vst [vmem:[#allocation11_spill] sm:$0xff] %v1301_v38 }
  0x9c   : > { %v1151_v32 = vpop.permute.xlu1 %219  ;;  %v1153_v33 = vpop.permute.xlu0 %214  ;;  %1963 = vst [vmem:[#allocation12_spill] sm:$0xff] %v1305_v39  ;;  %1964 = vst [vmem:[#allocation13_spill] sm:$0xff] %v1309_v42 }
  0x9d   : > { %1965 = vst [vmem:[#allocation14_spill] sm:$0xff] %v1325_v45  ;;  %v1329_v29 = vmul.f32 %v1159_v46, %v1151_v32  ;;  %v1333_v59 = vmul.f32 %v1161_v47, %v1151_v32  ;;  %v1337_v58 = vmul.f32 %v1163_v48, %v1151_v32  ;;  %v1341_v57 = vmul.f32 %v1165_v49, %v1151_v32 }
  0x9e   : > { %v1345_v30 = vmul.f32 %v1159_v46, %v1153_v33  ;;  %v1349_v56 = vmul.f32 %v1161_v47, %v1153_v33 }
  0x9f   : > { %1966 = vst [vmem:[#allocation15_spill] sm:$0xff] %v1329_v29  ;;  %1967 = vst [vmem:[#allocation16_spill] sm:$0xff] %v1333_v59  ;;  %v1353_v29 = vmul.f32 %v1163_v48, %v1153_v33  ;;  %v1357_v59 = vmul.f32 %v1165_v49, %v1153_v33 }
  0xa0   : > { %v1155_v40 = vpop.permute.xlu1 %229  ;;  %v1157_v41 = vpop.permute.xlu0 %224  ;;  %1968 = vst [vmem:[#allocation17_spill] sm:$0xff] %v1337_v58  ;;  %1969 = vst [vmem:[#allocation18_spill] sm:$0xff] %v1341_v57 }
  0xa1   : > { %1970 = vst [vmem:[#allocation19_spill] sm:$0xff] %v1345_v30  ;;  %1971 = vst [vmem:[#allocation20_spill] sm:$0xff] %v1349_v56  ;;  %v1361_v32 = vmul.f32 %v1159_v46, %v1155_v40  ;;  %v1365_v57 = vmul.f32 %v1161_v47, %v1155_v40  ;;  %v1369_v56 = vmul.f32 %v1163_v48, %v1155_v40 }
  0xa2   : > { %1972 = vst [vmem:[#allocation21_spill] sm:$0xff] %v1353_v29  ;;  %1973 = vst [vmem:[#allocation22_spill] sm:$0xff] %v1357_v59  ;;  %v1373_v29 = vmul.f32 %v1165_v49, %v1155_v40  ;;  %v1377_v33 = vmul.f32 %v1159_v46, %v1157_v41  ;;  %v1381_v59 = vmul.f32 %v1161_v47, %v1157_v41 }
  0xa3   : > { %1974 = vst [vmem:[#allocation23_spill] sm:$0xff] %v1361_v32  ;;  %1975 = vst [vmem:[#allocation24_spill] sm:$0xff] %v1365_v57  ;;  %v1387_v30 = vmul.f32 %v1163_v48, %v1157_v41 }
  0xa4   : > { %v1167_v50 = vpop.permute.xlu1 %239  ;;  %v1169_v51 = vpop.permute.xlu0 %234  ;;  %1976 = vst [vmem:[#allocation25_spill] sm:$0xff] %v1369_v56  ;;  %1977 = vst [vmem:[#allocation26_spill] sm:$0xff] %v1373_v29 }
  0xa5   : > { %1955 = vst [vmem:[#allocation4_spill] sm:$0xff] %v1169_v51  ;;  %1978 = vst [vmem:[#allocation27_spill] sm:$0xff] %v1377_v33  ;;  %v1394_v33 = vmul.f32 %v1165_v49, %v1157_v41  ;;  %v1402_v39 = vmul.f32 %v1161_v47, %v1167_v50  ;;  %v1411_v41 = vmul.f32 %v1165_v49, %v1167_v50 }
  0xa6   : > { %1979 = vst [vmem:[#allocation28_spill] sm:$0xff] %v1381_v59  ;;  %1980 = vst [vmem:[#allocation29_spill] sm:$0xff] %v1387_v30  ;;  %v1398_v59 = vmul.f32 %v1159_v46, %v1167_v50 }
  0xa7   : > { %1981 = vst [vmem:[#allocation30_spill] sm:$0xff] %v1394_v33  ;;  %1983 = vst [vmem:[#allocation32_spill] sm:$0xff] %v1402_v39  ;;  %v1415_v33 = vmul.f32 %v1159_v46, %v1169_v51  ;;  %v1420_v39 = vmul.f32 %v1161_v47, %v1169_v51 }
  0xa8   : > { %1982 = vst [vmem:[#allocation31_spill] sm:$0xff] %v1398_v59  ;;  %1985 = vst [vmem:[#allocation34_spill] sm:$0xff] %v1411_v41 }
  0xa9   : > { %v268_v12 = vpop.permute.xlu1 %267  ;;  %v264_v13 = vpop.permute.xlu0 %263 }
  0xaa   : > { %v331_v32 = vmul.f32 %v1171_v52, %v268_v12  ;;  %v487_v57 = vmul.f32 %v1173_v53, %v268_v12  ;;  %v595_v56 = vmul.f32 %v1175_v54, %v268_v12  ;;  %v703_v40 = vmul.f32 %v1177_v55, %v268_v12 }
  0xab   : > { %v330_v29 = vmul.f32 %v1171_v52, %v264_v13  ;;  %v486_v30 = vmul.f32 %v1173_v53, %v264_v13  ;;  %v1407_v12 = vmul.f32 %v1163_v48, %v1167_v50  ;;  %v594_v59 = vmul.f32 %v1175_v54, %v264_v13 }
  0xac   : > { %v1423_v26 = vadd.f32 %v331_v32, %v1224_v8  ;;  %v1426_v48 = vadd.f32 %v487_v57, %v1227_v9  ;;  %v1430_v50 = vadd.f32 %v595_v56, %v1230_v10  ;;  %v1437_v41 = vadd.f32 %v703_v40, %v1233_v11 }
  0xad   : > { %v272_v36 = vpop.permute.xlu1 %271  ;;  %v276_v37 = vpop.permute.xlu0 %275  ;;  %1984 = vst [vmem:[#allocation33_spill] sm:$0xff] %v1407_v12  ;;  %v702_v12 = vmul.f32 %v1177_v55, %v264_v13  ;;  %v1433_v46 = vadd.f32 %v330_v29, %v1200_v0  ;;  %v1440_v47 = vadd.f32 %v486_v30, %v1203_v1  ;;  %v1446_v10 = vadd.f32 %v594_v59, %v1206_v2 }
  0xae   : > { %1986 = vst [vmem:[#allocation35_spill] sm:$0xff] %v1430_v50  ;;  %v332_v49 = vmul.f32 %v1171_v52, %v272_v36  ;;  %1987 = vst [vmem:[#allocation36_spill] sm:$0xff] %v1437_v41  ;;  %v488_v8 = vmul.f32 %v1173_v53, %v272_v36  ;;  %v596_v57 = vmul.f32 %v1175_v54, %v272_v36 }
  0xaf   : > { %v704_v9 = vmul.f32 %v1177_v55, %v272_v36  ;;  %1988 = vst [vmem:[#allocation37_spill] sm:$0xff] %v1446_v10  ;;  %v333_v0 = vmul.f32 %v1171_v52, %v276_v37  ;;  %v489_v29 = vmul.f32 %v1173_v53, %v276_v37  ;;  %v597_v11 = vmul.f32 %v1175_v54, %v276_v37 }
  0xb0   : > { %v705_v1 = vmul.f32 %v1177_v55, %v276_v37  ;;  %v1455_v40 = vadd.f32 %v702_v12, %v1209_v3  ;;  %v1458_v36 = vadd.f32 %v332_v49, %v1188_v60  ;;  %v1464_v41 = vadd.f32 %v488_v8, %v1191_v61 }
  0xb1   : > { %v280_v58 = vpop.permute.xlu1 %279  ;;  %v284_v42 = vpop.permute.xlu0 %283  ;;  %v1467_v37 = vadd.f32 %v596_v57, %v1194_v62  ;;  %v1471_v12 = vadd.f32 %v704_v9, %v1197_v63  ;;  %v1474_v49 = vadd.f32 %v333_v0, %v1212_v4  ;;  %v1480_v60 = vadd.f32 %v597_v11, %v1218_v6 }
  0xb2   : > { %v334_v30 = vmul.f32 %v1171_v52, %v280_v58  ;;  %v490_v32 = vmul.f32 %v1173_v53, %v280_v58  ;;  %v598_v59 = vmul.f32 %v1175_v54, %v280_v58  ;;  %v706_v2 = vmul.f32 %v1177_v55, %v280_v58 }
  0xb3   : > { %v335_v51 = vmul.f32 %v1171_v52, %v284_v42  ;;  %v491_v50 = vmul.f32 %v1173_v53, %v284_v42  ;;  %v1477_v58 = vadd.f32 %v489_v29, %v1215_v5  ;;  %v599_v61 = vmul.f32 %v1175_v54, %v284_v42 }
  0xb4   : > { %v1484_v62 = vadd.f32 %v334_v30, %v1249_v18  ;;  %v1487_v8 = vadd.f32 %v490_v32, %v1253_v19  ;;  %v707_v63 = vmul.f32 %v1177_v55, %v284_v42  ;;  %v1491_v57 = vadd.f32 %v705_v1, %v1221_v7 }
  0xb5   : > { %v288_v38 = vpop.permute.xlu1 %287  ;;  %v292_v45 = vpop.permute.xlu0 %291  ;;  %v1494_v4 = vadd.f32 %v598_v59, %v1257_v20  ;;  %v1497_v5 = vadd.f32 %v335_v51, %v1236_v14  ;;  %v1501_v9 = vadd.f32 %v706_v2, %v1261_v21  ;;  %v1504_v18 = vadd.f32 %v491_v50, %v1239_v15 }
  0xb6   : > { %v336_v6 = vmul.f32 %v1171_v52, %v288_v38  ;;  %v492_v19 = vmul.f32 %v1173_v53, %v288_v38  ;;  %v600_v42 = vmul.f32 %v1175_v54, %v288_v38  ;;  %v708_v7 = vmul.f32 %v1177_v55, %v288_v38 }
  0xb7   : > { %1989 = vst [vmem:[#allocation38_spill] sm:$0xff] %v1494_v4  ;;  %1990 = vst [vmem:[#allocation39_spill] sm:$0xff] %v1501_v9  ;;  %v1510_v29 = vadd.f32 %v599_v61, %v1242_v16  ;;  %v337_v51 = vmul.f32 %v1171_v52, %v292_v45  ;;  %v493_v14 = vmul.f32 %v1173_v53, %v292_v45 }
  0xb8   : > { %v601_v21 = vmul.f32 %v1175_v54, %v292_v45  ;;  %v709_v15 = vmul.f32 %v1177_v55, %v292_v45  ;;  %v1519_v1 = vadd.f32 %v707_v63, %v1245_v17  ;;  %v1522_v38 = vadd.f32 %v336_v6, %v1281_v25 }
  0xb9   : > { %v296_v13 = vpop.permute.xlu1 %295  ;;  %v300_v56 = vpop.permute.xlu0 %299  ;;  %v1528_v59 = vadd.f32 %v492_v19, %v1285_v31  ;;  %v1531_v45 = vadd.f32 %v600_v42, %v1289_v34  ;;  %v1539_v25 = vadd.f32 %v708_v7, %v1293_v35  ;;  %v1542_v63 = vadd.f32 %v337_v51, %v1265_v22  ;;  %v2000_v51 = vld [vmem:[#allocation14_spill] sm:$0xff] }
  0xba   : > { %v338_v50 = vmul.f32 %v1171_v52, %v296_v13  ;;  %v494_v11 = vmul.f32 %v1173_v53, %v296_v13  ;;  %1991 = vst [vmem:[#allocation40_spill] sm:$0xff] %v1519_v1  ;;  %v602_v16 = vmul.f32 %v1175_v54, %v296_v13  ;;  %v710_v30 = vmul.f32 %v1177_v55, %v296_v13 }
  0xbb   : > { %v339_v32 = vmul.f32 %v1171_v52, %v300_v56  ;;  %1992 = vst [vmem:[#allocation41_spill] sm:$0xff] %v1531_v45  ;;  %v495_v2 = vmul.f32 %v1173_v53, %v300_v56  ;;  %1994 = vst [vmem:[#allocation43_spill] sm:$0xff] %v1539_v25  ;;  %v1545_v13 = vadd.f32 %v493_v14, %v1269_v23  ;;  %v1998_v23 = vld [vmem:[#allocation10_spill] sm:$0xff]  ;;  %v2009_v45 = vld [vmem:[#allocation20_spill] sm:$0xff] }
  0xbc   : > { %v1548_v31 = vadd.f32 %v601_v21, %v1273_v24  ;;  %v603_v34 = vmul.f32 %v1175_v54, %v300_v56  ;;  %v1552_v6 = vadd.f32 %v338_v50, %v1313_v27  ;;  %v1555_v19 = vadd.f32 %v494_v11, %v1317_v43  ;;  %v2002_v27 = vld [vmem:[#allocation11_spill] sm:$0xff] }
  0xbd   : > { %v304_v10 = vpop.permute.xlu1 %303  ;;  %v308_v3 = vpop.permute.xlu0 %307  ;;  %v711_v35 = vmul.f32 %v1177_v55, %v300_v56  ;;  %v1559_v42 = vadd.f32 %v709_v15, %v1277_v28  ;;  %v1562_v22 = vadd.f32 %v602_v16, %v1321_v44  ;;  %v1565_v7 = vadd.f32 %v339_v32, %v1998_v23  ;;  %v2004_v15 = vld [vmem:[#allocation12_spill] sm:$0xff] }
  0xbe   : > { %1995 = vst [vmem:[#allocation44_spill] sm:$0xff] %v1548_v31  ;;  %v340_v24 = vmul.f32 %v1171_v52, %v304_v10  ;;  %v1569_v14 = vadd.f32 %v710_v30, %v2000_v51  ;;  %v1572_v21 = vadd.f32 %v495_v2, %v2002_v27  ;;  %v496_v43 = vmul.f32 %v1173_v53, %v304_v10  ;;  %v2006_v27 = vld [vmem:[#allocation13_spill] sm:$0xff] }
  0xbf   : > { %1996 = vst [vmem:[#allocation45_spill] sm:$0xff] %v1559_v42  ;;  %1997 = vst [vmem:[#allocation46_spill] sm:$0xff] %v1562_v22  ;;  %v604_v56 = vmul.f32 %v1175_v54, %v304_v10  ;;  %v712_v28 = vmul.f32 %v1177_v55, %v304_v10  ;;  %v1578_v44 = vadd.f32 %v603_v34, %v2004_v15  ;;  %v2008_v10 = vld [vmem:[#allocation19_spill] sm:$0xff]  ;;  %v2012_v42 = vld [vmem:[#allocation22_spill] sm:$0xff] }
  0xc0   : > { %1999 = vst [vmem:[#allocation10_spill] sm:$0xff] %v1565_v7  ;;  %2001 = vst [vmem:[#allocation14_spill] sm:$0xff] %v1569_v14  ;;  %v341_v50 = vmul.f32 %v1171_v52, %v308_v3  ;;  %v497_v11 = vmul.f32 %v1173_v53, %v308_v3  ;;  %v605_v16 = vmul.f32 %v1175_v54, %v308_v3  ;;  %v2016_v31 = vld [vmem:[#allocation17_spill] sm:$0xff] }
  0xc1   : > { %v312_v0 = vpop.permute.xlu1 %311  ;;  %v316_v20 = vpop.permute.xlu0 %315  ;;  %2003 = vst [vmem:[#allocation11_spill] sm:$0xff] %v1572_v21  ;;  %2005 = vst [vmem:[#allocation12_spill] sm:$0xff] %v1578_v44  ;;  %v713_v2 = vmul.f32 %v1177_v55, %v308_v3  ;;  %v1587_v14 = vadd.f32 %v711_v35, %v2006_v27  ;;  %v1590_v34 = vadd.f32 %v340_v24, %v2008_v10  ;;  %v2010_v3 = vld [vmem:[#allocation21_spill] sm:$0xff]  ;;  %v2014_v27 = vld [vmem:[#allocation15_spill] sm:$0xff] }
  0xc2   : > { %v342_v23 = vmul.f32 %v1171_v52, %v312_v0  ;;  %v498_v51 = vmul.f32 %v1173_v53, %v312_v0  ;;  %v606_v15 = vmul.f32 %v1175_v54, %v312_v0  ;;  %v343_v22 = vmul.f32 %v1171_v52, %v316_v20  ;;  %v2015_v10 = vld [vmem:[#allocation16_spill] sm:$0xff] }
  0xc3   : > { %2007 = vst [vmem:[#allocation13_spill] sm:$0xff] %v1587_v14  ;;  %v499_v25 = vmul.f32 %v1173_v53, %v316_v20  ;;  %v1596_v9 = vadd.f32 %v496_v43, %v2009_v45  ;;  %v1599_v44 = vadd.f32 %v604_v56, %v2010_v3  ;;  %v607_v4 = vmul.f32 %v1175_v54, %v316_v20  ;;  %v2018_v56 = vld [vmem:[#allocation27_spill] sm:$0xff] }
  0xc4   : > { %v1603_v35 = vadd.f32 %v712_v28, %v2012_v42  ;;  %v1606_v24 = vadd.f32 %v341_v50, %v2014_v27  ;;  %v1609_v14 = vadd.f32 %v497_v11, %v2015_v10  ;;  %v1612_v1 = vadd.f32 %v605_v16, %v2016_v31  ;;  %v2021_v28 = vld [vmem:[#allocation18_spill] sm:$0xff]  ;;  %v2023_v11 = vld [vmem:[#allocation29_spill] sm:$0xff]  ;;  %v2025_v31 = vld [vmem:[#allocation23_spill] sm:$0xff] }
  0xc5   : > { %v1534_v61 = vpop.permute.xlu1 %319  ;;  %v1536_v17 = vpop.permute.xlu0 %323  ;;  %2011 = vst [vmem:[#allocation19_spill] sm:$0xff] %v1599_v44  ;;  %v715_v45 = vmul.f32 %v1177_v55, %v316_v20  ;;  %v1616_v3 = vadd.f32 %v342_v23, %v2018_v56  ;;  %v2019_v44 = vld [vmem:[#allocation28_spill] sm:$0xff]  ;;  %v1622_v42 = vmul.f32 %v1177_v55, %v312_v0  ;;  %v1625_v50 = vadd.f32 %v713_v2, %v2021_v28  ;;  %v2031_v28 = vld [vmem:[#allocation7_spill] sm:$0xff] }
  0xc6   : > { %1993 = vst [vmem:[#allocation42_spill] sm:$0xff] %v1534_v61  ;;  %2013 = vst [vmem:[#allocation20_spill] sm:$0xff] %v1603_v35  ;;  %v1619_v7 = vadd.f32 %v498_v51, %v2019_v44  ;;  %v1628_v27 = vadd.f32 %v606_v15, %v2023_v11  ;;  %v1631_v16 = vadd.f32 %v343_v22, %v2025_v31  ;;  %v2026_v20 = vld [vmem:[#allocation24_spill] sm:$0xff]  ;;  %v2028_v44 = vld [vmem:[#allocation25_spill] sm:$0xff] }
  0xc7   : > { %2017 = vst [vmem:[#allocation21_spill] sm:$0xff] %v1612_v1  ;;  %2020 = vst [vmem:[#allocation22_spill] sm:$0xff] %v1622_v42  ;;  %v1634_v10 = vadd.f32 %v499_v25, %v2026_v20  ;;  %v344_v23 = vmul.f32 %v1171_v52, %v1534_v61  ;;  %v1639_v51 = vadd.f32 %v607_v4, %v2028_v44  ;;  %v2030_v25 = vld [vmem:[#allocation6_spill] sm:$0xff]  ;;  %v2038_v1 = vld [vmem:[#allocation9_spill] sm:$0xff] }
  0xc8   : > { %2022 = vst [vmem:[#allocation15_spill] sm:$0xff] %v1625_v50  ;;  %2024 = vst [vmem:[#allocation16_spill] sm:$0xff] %v1628_v27  ;;  %v500_v0 = vmul.f32 %v1173_v53, %v1534_v61  ;;  %v345_v2 = vmul.f32 %v1171_v52, %v1536_v17  ;;  %v501_v15 = vmul.f32 %v1173_v53, %v1536_v17  ;;  %v2032_v4 = vld [vmem:[#allocation26_spill] sm:$0xff]  ;;  %v2035_v52 = vld [vmem:[#allocation8_spill] sm:$0xff] }
  0xc9   : > { %2027 = vst [vmem:[#allocation17_spill] sm:$0xff] %v1634_v10  ;;  %2029 = vst [vmem:[#allocation27_spill] sm:$0xff] %v1639_v51  ;;  %v609_v22 = vmul.f32 %v1175_v54, %v1536_v17  ;;  %v1652_v44 = vadd.f32 %v715_v45, %v2032_v4  ;;  %v1656_v42 = vmul.f32 %v1175_v54, %v1534_v61  ;;  %v2040_v61 = vld [vmem:[#allocation31_spill] sm:$0xff] }
  0xca   : > { %v364_v30 = vpop.permute.xlu1 %363  ;;  %v368_v32 = vpop.permute.xlu0 %367  ;;  %v1662_v51 = vadd.f32 %v344_v23, %v1415_v33  ;;  %v1666_v50 = vmul.f32 %v1177_v55, %v1536_v17  ;;  %v1671_v54 = vadd.f32 %v500_v0, %v1420_v39  ;;  %v2043_v23 = vld [vmem:[#allocation33_spill] sm:$0xff] }
  0xcb   : > { %v430_v56 = vmul.f32 %v2030_v25, %v364_v30  ;;  %v522_v11 = vmul.f32 %v2031_v28, %v364_v30  ;;  %2033 = vst [vmem:[#allocation28_spill] sm:$0xff] %v1652_v44  ;;  %2034 = vst [vmem:[#allocation18_spill] sm:$0xff] %v1656_v42  ;;  %v630_v27 = vmul.f32 %v2035_v52, %v364_v30  ;;  %v2041_v44 = vld [vmem:[#allocation32_spill] sm:$0xff] }
  0xcc   : > { %v431_v53 = vmul.f32 %v2030_v25, %v368_v32  ;;  %v523_v35 = vmul.f32 %v2031_v28, %v368_v32  ;;  %2036 = vst [vmem:[#allocation29_spill] sm:$0xff] %v1662_v51  ;;  %2037 = vst [vmem:[#allocation23_spill] sm:$0xff] %v1666_v50  ;;  %v738_v45 = vmul.f32 %v2038_v1, %v364_v30 }
  0xcd   : > { %v631_v4 = vmul.f32 %v2035_v52, %v368_v32  ;;  %2039 = vst [vmem:[#allocation24_spill] sm:$0xff] %v1671_v54  ;;  %v1674_v42 = vadd.f32 %v345_v2, %v2040_v61  ;;  %v1677_v10 = vadd.f32 %v501_v15, %v2041_v44  ;;  %v739_v33 = vmul.f32 %v2038_v1, %v368_v32  ;;  %v2045_v15 = vld [vmem:[#allocation37_spill] sm:$0xff] }
  0xce   : > { %v372_v43 = vpop.permute.xlu1 %371  ;;  %v380_v21 = vpop.permute.xlu0 %379  ;;  %v1681_v51 = vadd.f32 %v609_v22, %v2043_v23  ;;  %v446_v17 = vadd.f32 %v430_v56, %v1433_v46  ;;  %v538_v30 = vadd.f32 %v522_v11, %v1440_v47  ;;  %v447_v0 = vadd.f32 %v431_v53, %v1423_v26  ;;  %v2046_v47 = vld [vmem:[#allocation35_spill] sm:$0xff] }
  0xcf   : > { %2042 = vst [vmem:[#allocation25_spill] sm:$0xff] %v1677_v10  ;;  %v432_v55 = vmul.f32 %v2030_v25, %v372_v43  ;;  %v539_v61 = vadd.f32 %v523_v35, %v1426_v48  ;;  %v524_v2 = vmul.f32 %v2031_v28, %v372_v43  ;;  %v646_v44 = vadd.f32 %v630_v27, %v2045_v15  ;;  %v2047_v48 = vld [vmem:[#allocation36_spill] sm:$0xff] }
  0xd0   : > { %2044 = vst [vmem:[#allocation6_spill] sm:$0xff] %v1681_v51  ;;  %v434_v32 = vmul.f32 %v2030_v25, %v380_v21  ;;  %v526_v22 = vmul.f32 %v2031_v28, %v380_v21  ;;  %v1693_v46 = vadd.f32 %v738_v45, %v1455_v40  ;;  %v647_v56 = vadd.f32 %v631_v4, %v2046_v47 }
  0xd1   : > { %v632_v11 = vmul.f32 %v2035_v52, %v372_v43  ;;  %v740_v23 = vmul.f32 %v2038_v1, %v372_v43  ;;  %v1699_v26 = vmul.f32 %v2035_v52, %v380_v21  ;;  %v1702_v35 = vadd.f32 %v739_v33, %v2047_v48 }
  0xd2   : > { %v376_v31 = vpop.permute.xlu1 %375  ;;  %v388_v20 = vpop.permute.xlu0 %387  ;;  %v1705_v27 = vadd.f32 %v432_v55, %v1458_v36  ;;  %v1708_v53 = vmul.f32 %v2038_v1, %v380_v21  ;;  %v1713_v43 = vadd.f32 %v524_v2, %v1464_v41  ;;  %v554_v54 = vmax.f32 %v446_v17, %v538_v30 }
  0xd3   : > { %v433_v40 = vmul.f32 %v2030_v25, %v376_v31  ;;  %v525_v45 = vmul.f32 %v2031_v28, %v376_v31  ;;  %v633_v47 = vmul.f32 %v2035_v52, %v376_v31  ;;  %v555_v33 = vmax.f32 %v447_v0, %v539_v61 }
  0xd4   : > { %v1717_v48 = vadd.f32 %v434_v32, %v1484_v62  ;;  %v1720_v55 = vadd.f32 %v526_v22, %v1487_v8  ;;  %v436_v36 = vmul.f32 %v2030_v25, %v388_v20  ;;  %v528_v21 = vmul.f32 %v2031_v28, %v388_v20 }
  0xd5   : > { %v741_v51 = vmul.f32 %v2038_v1, %v376_v31  ;;  %v1727_v41 = vadd.f32 %v632_v11, %v1467_v37  ;;  %v1730_v17 = vadd.f32 %v740_v23, %v1471_v12  ;;  %v449_v62 = vadd.f32 %v433_v40, %v1474_v49 }
  0xd6   : > { %v384_v50 = vpop.permute.xlu1 %383  ;;  %v396_v39 = vpop.permute.xlu0 %395  ;;  %v541_v30 = vadd.f32 %v525_v45, %v1477_v58  ;;  %v1735_v8 = vmul.f32 %v2035_v52, %v388_v20  ;;  %v1741_v31 = vmul.f32 %v2038_v1, %v388_v20  ;;  %v662_v32 = vmax.f32 %v554_v54, %v646_v44 }
  0xd7   : > { %v435_v10 = vmul.f32 %v2030_v25, %v384_v50  ;;  %v527_v0 = vmul.f32 %v2031_v28, %v384_v50  ;;  %v438_v37 = vmul.f32 %v2030_v25, %v396_v39  ;;  %v649_v12 = vadd.f32 %v633_v47, %v1480_v60 }
  0xd8   : > { %v1746_v49 = vadd.f32 %v436_v36, %v1522_v38  ;;  %v1749_v58 = vadd.f32 %v528_v21, %v1528_v59  ;;  %v530_v22 = vmul.f32 %v2031_v28, %v396_v39  ;;  %v1752_v11 = vmax.f32 %v555_v33, %v647_v56 }
  0xd9   : > { %v451_v23 = vadd.f32 %v435_v10, %v1497_v5  ;;  %v635_v20 = vmul.f32 %v2035_v52, %v384_v50  ;;  %v743_v40 = vmul.f32 %v2038_v1, %v384_v50  ;;  %v757_v54 = vadd.f32 %v741_v51, %v1491_v57 }
  0xda   : > { %v392_v4 = vpop.permute.xlu1 %391  ;;  %v404_v15 = vpop.permute.xlu0 %403  ;;  %v543_v60 = vadd.f32 %v527_v0, %v1504_v18  ;;  %v557_v56 = vmax.f32 %v449_v62, %v541_v30  ;;  %v1766_v5 = vadd.f32 %v438_v37, %v1552_v6  ;;  %v1769_v10 = vmul.f32 %v2035_v52, %v396_v39 }
  0xdb   : > { %v437_v38 = vmul.f32 %v2030_v25, %v392_v4  ;;  %v529_v59 = vmul.f32 %v2031_v28, %v392_v4  ;;  %v1772_v50 = vmul.f32 %v2038_v1, %v396_v39  ;;  %v770_v57 = vmax.f32 %v662_v32, %v1693_v46 }
  0xdc   : > { %v1776_v18 = vadd.f32 %v530_v22, %v1555_v19  ;;  %v440_v51 = vmul.f32 %v2030_v25, %v404_v15  ;;  %v532_v47 = vmul.f32 %v2031_v28, %v404_v15  ;;  %v771_v6 = vmax.f32 %v1752_v11, %v1702_v35 }
  0xdd   : > { %v637_v33 = vmul.f32 %v2035_v52, %v392_v4  ;;  %v651_v21 = vadd.f32 %v635_v20, %v1510_v29  ;;  %v453_v46 = vadd.f32 %v437_v38, %v1542_v63  ;;  %v545_v19 = vadd.f32 %v529_v59, %v1545_v13 }
  0xde   : > { %v400_v61 = vpop.permute.xlu1 %399  ;;  %v1738_v2 = vpop.permute.xlu0 %411  ;;  %v665_v30 = vmax.f32 %v557_v56, %v649_v12  ;;  %v559_v0 = vmax.f32 %v451_v23, %v543_v60  ;;  %v745_v37 = vmul.f32 %v2038_v1, %v392_v4  ;;  %v1793_v35 = vmul.f32 %v2035_v52, %v404_v15  ;;  %v2048_v12 = vld [vmem:[#allocation10_spill] sm:$0xff]  ;;  %v2049_v23 = vld [vmem:[#allocation11_spill] sm:$0xff] }
  0xdf   : > { %v439_v36 = vmul.f32 %v2030_v25, %v400_v61  ;;  %v531_v39 = vmul.f32 %v2031_v28, %v400_v61  ;;  %v1796_v32 = vmul.f32 %v2038_v1, %v404_v15  ;;  %v556_v29 = vmax.f32 %v1705_v27, %v1713_v43 }
  0xe0   : > { %v1806_v63 = vadd.f32 %v440_v51, %v1590_v34  ;;  %v1809_v13 = vadd.f32 %v532_v47, %v1596_v9  ;;  %v442_v4 = vmul.f32 %v2030_v25, %v1738_v2  ;;  %v534_v60 = vmul.f32 %v2031_v28, %v1738_v2  ;;  %v2050_v47 = vld [vmem:[#allocation40_spill] sm:$0xff] }
  0xe1   : > { %v455_v11 = vadd.f32 %v439_v36, %v2048_v12  ;;  %v547_v20 = vadd.f32 %v531_v39, %v2049_v23  ;;  %v773_v43 = vmax.f32 %v665_v30, %v757_v54  ;;  %v667_v38 = vmax.f32 %v559_v0, %v651_v21  ;;  %v2051_v54 = vld [vmem:[#allocation44_spill] sm:$0xff] }
  0xe2   : > { %v1761_v44 = vpop.permute.xlu1 %407  ;;  %v1763_v45 = vpop.permute.xlu0 %419  ;;  %v561_v59 = vmax.f32 %v453_v46, %v545_v19  ;;  %v639_v56 = vmul.f32 %v2035_v52, %v400_v61  ;;  %v759_v36 = vadd.f32 %v743_v40, %v2050_v47  ;;  %v664_v39 = vmax.f32 %v556_v29, %v1727_v41 }
  0xe3   : > { %v441_v27 = vmul.f32 %v2030_v25, %v1761_v44  ;;  %v533_v34 = vmul.f32 %v2031_v28, %v1761_v44  ;;  %v653_v21 = vadd.f32 %v637_v33, %v2051_v54  ;;  %v1835_v46 = vadd.f32 %v534_v60, %v1619_v7  ;;  %v2053_v60 = vld [vmem:[#allocation38_spill] sm:$0xff] }
  0xe4   : > { %v558_v41 = vmax.f32 %v1717_v48, %v1720_v55  ;;  %v775_v40 = vmax.f32 %v667_v38, %v759_v36  ;;  %v563_v0 = vmax.f32 %v455_v11, %v547_v20  ;;  %v641_v33 = vmul.f32 %v2035_v52, %v1761_v44  ;;  %v2055_v20 = vld [vmem:[#allocation17_spill] sm:$0xff] }
  0xe5   : > { %v457_v19 = vadd.f32 %v441_v27, %v1606_v24  ;;  %v669_v30 = vmax.f32 %v561_v59, %v653_v21  ;;  %v772_v24 = vmax.f32 %v664_v39, %v1730_v17  ;;  %v650_v48 = vadd.f32 %v1699_v26, %v2053_v60  ;;  %v2056_v39 = vld [vmem:[#allocation39_spill] sm:$0xff]  ;;  %v2058_v21 = vld [vmem:[#allocation13_spill] sm:$0xff] }
  0xe6   : > { %v1789_v62 = vpop.permute.xlu1 %415  ;;  %v560_v17 = vmax.f32 %v1746_v49, %v1749_v58  ;;  %v758_v49 = vadd.f32 %v1708_v53, %v2056_v39  ;;  %v2057_v58 = vld [vmem:[#allocation41_spill] sm:$0xff] }
  0xe7   : > { %v788_v22 = vpop.permute.xlu0 %787  ;;  %v666_v59 = vmax.f32 %v558_v41, %v650_v48 }
  0xe8   : > { %v850_v15 = vadd.f32 %v788_v22, %v770_v57  ;;  %v747_v57 = vmul.f32 %v2038_v1, %v400_v61  ;;  %v1829_v22 = vadd.f32 %v442_v4, %v1616_v3  ;;  %v535_v61 = vmul.f32 %v2031_v28, %v1789_v62  ;;  %v2052_v4 = vld [vmem:[#allocation45_spill] sm:$0xff] }
  0xe9   : > { %v549_v3 = vadd.f32 %v533_v34, %v1609_v14  ;;  %v761_v23 = vadd.f32 %v745_v37, %v2052_v4  ;;  %v2054_v34 = vld [vmem:[#allocation12_spill] sm:$0xff]  ;;  %v2061_v4 = vld [vmem:[#allocation43_spill] sm:$0xff] }
  0xea   : > { %866 = vst [vmem:[%s1801_s23] sm:$0xff] %v850_v15  ;;  %v1822_v9 = vpop.permute.xlu1 %423  ;;  %v443_v15 = vmul.f32 %v2030_v25, %v1789_v62  ;;  %v655_v11 = vadd.f32 %v639_v56, %v2054_v34  ;;  %v749_v56 = vmul.f32 %v2038_v1, %v1761_v44 }
  0xeb   : > { %v800_v51 = vpop.permute.xlu0 %799  ;;  %v445_v38 = vmul.f32 %v2030_v25, %v1822_v9  ;;  %v537_v37 = vmul.f32 %v2031_v28, %v1822_v9  ;;  %v777_v26 = vmax.f32 %v669_v30, %v761_v23  ;;  %v562_v30 = vmax.f32 %v1766_v5, %v1776_v18  ;;  %v2062_v18 = vld [vmem:[#allocation46_spill] sm:$0xff] }
  0xec   : > { %v853_v12 = vadd.f32 %v800_v51, %v773_v43  ;;  %v459_v14 = vadd.f32 %v443_v15, %v1631_v16  ;;  %v551_v43 = vadd.f32 %v535_v61, %v2055_v20  ;;  %v671_v16 = vmax.f32 %v563_v0, %v655_v11  ;;  %v2059_v61 = vld [vmem:[#allocation21_spill] sm:$0xff] }
  0xed   : > { %v643_v51 = vmul.f32 %v2035_v52, %v1789_v62  ;;  %v652_v15 = vadd.f32 %v1735_v8, %v2057_v58  ;;  %v657_v41 = vadd.f32 %v641_v33, %v2059_v61  ;;  %v461_v44 = vadd.f32 %v445_v38, %v1674_v42  ;;  %v2060_v0 = vld [vmem:[#allocation25_spill] sm:$0xff] }
  0xee   : > { %869 = vst [vmem:[%s1801_s23 + $0x18] sm:$0xff] %v853_v12  ;;  %v567_v8 = vmax.f32 %v459_v14, %v551_v43  ;;  %v645_v42 = vmul.f32 %v2035_v52, %v1822_v9  ;;  %v760_v5 = vadd.f32 %v1741_v31, %v2061_v4  ;;  %v654_v23 = vadd.f32 %v1769_v10, %v2062_v18  ;;  %v2064_v14 = vld [vmem:[#allocation27_spill] sm:$0xff]  ;;  %v2079_v18 = vld [vmem:[#allocation5_spill] sm:$0xff] }
  0xef   : > { %v792_v7 = vpop.permute.xlu1 %791  ;;  %v808_v29 = vpop.permute.xlu0 %807  ;;  %v659_v34 = vadd.f32 %v643_v51, %v2064_v14  ;;  %v536_v11 = vmul.f32 %v2031_v28, %v1763_v45  ;;  %v564_v10 = vmax.f32 %v1806_v63, %v1809_v13  ;;  %v2068_v13 = vld [vmem:[#allocation6_spill] sm:$0xff]  ;;  %v2082_v14 = vld [vmem:[#allocation3_spill] sm:$0xff] }
  0xf0   : > { %v851_v55 = vadd.f32 %v792_v7, %v771_v6  ;;  %v855_v27 = vadd.f32 %v808_v29, %v775_v40  ;;  %v565_v6 = vmax.f32 %v457_v19, %v549_v3  ;;  %v763_v19 = vadd.f32 %v747_v57, %v2058_v21  ;;  %v2072_v21 = vld [vmem:[#allocation23_spill] sm:$0xff] }
  0xf1   : > { %v774_v3 = vmax.f32 %v666_v59, %v758_v49  ;;  %v668_v40 = vmax.f32 %v560_v17, %v652_v15  ;;  %v553_v7 = vadd.f32 %v537_v37, %v2060_v0  ;;  %v751_v57 = vmul.f32 %v2038_v1, %v1789_v62  ;;  %v2069_v49 = vld [vmem:[#allocation29_spill] sm:$0xff]  ;;  %v2070_v15 = vld [vmem:[#allocation24_spill] sm:$0xff] }
  0xf2   : > { %867 = vst [vmem:[%s1801_s23 + $0x8] sm:$0xff] %v851_v55  ;;  %871 = vst [vmem:[%s1801_s23 + $0x28] sm:$0xff] %v855_v27  ;;  %v779_v53 = vmax.f32 %v671_v16, %v763_v19  ;;  %v673_v29 = vmax.f32 %v565_v6, %v657_v41  ;;  %v2063_v55 = vld [vmem:[#allocation15_spill] sm:$0xff]  ;;  %v444_v62 = vmul.f32 %v2030_v25, %v1763_v45  ;;  %v2066_v6 = vld [vmem:[#allocation28_spill] sm:$0xff] }
  0xf3   : > { %v796_v47 = vpop.permute.xlu1 %795  ;;  %v816_v36 = vpop.permute.xlu0 %815  ;;  %v765_v27 = vadd.f32 %v749_v56, %v2063_v55  ;;  %v776_v20 = vmax.f32 %v668_v40, %v760_v5  ;;  %v670_v43 = vmax.f32 %v562_v30, %v654_v23  ;;  %v675_v38 = vmax.f32 %v567_v8, %v659_v34  ;;  %v2078_v5 = vld [vmem:[#allocation42_spill] sm:$0xff] }
  0xf4   : > { %v852_v12 = vadd.f32 %v796_v47, %v772_v24  ;;  %v857_v54 = vadd.f32 %v816_v36, %v777_v26  ;;  %v569_v59 = vmax.f32 %v461_v44, %v553_v7  ;;  %v642_v17 = vmul.f32 %v2035_v52, %v1738_v2  ;;  %v2065_v26 = vld [vmem:[#allocation14_spill] sm:$0xff]  ;;  %v2067_v36 = vld [vmem:[#allocation19_spill] sm:$0xff]  ;;  %v2073_v44 = vld [vmem:[#allocation4_spill] sm:$0xff] }
  0xf5   : > { %v781_v31 = vmax.f32 %v673_v29, %v765_v27  ;;  %v753_v25 = vmul.f32 %v2038_v1, %v1822_v9  ;;  %v762_v16 = vadd.f32 %v1772_v50, %v2065_v26  ;;  %v767_v56 = vadd.f32 %v751_v57, %v2066_v6  ;;  %v2071_v9 = vld [vmem:[#allocation34_spill] sm:$0xff]  ;;  %v2075_v29 = vld [vmem:[#allocation20_spill] sm:$0xff] }
  0xf6   : > { %868 = vst [vmem:[%s1801_s23 + $0x10] sm:$0xff] %v852_v12  ;;  %873 = vst [vmem:[%s1801_s23 + $0x38] sm:$0xff] %v857_v54  ;;  %v656_v63 = vadd.f32 %v1793_v35, %v2067_v36  ;;  %v661_v39 = vadd.f32 %v645_v42, %v2068_v13  ;;  %v460_v58 = vadd.f32 %v444_v62, %v2069_v49 }
  0xf7   : > { %v804_v33 = vpop.permute.xlu1 %803  ;;  %v824_v24 = vpop.permute.xlu0 %823  ;;  %v552_v12 = vadd.f32 %v536_v11, %v2070_v15  ;;  %v778_v54 = vmax.f32 %v670_v43, %v762_v16  ;;  %v733_v19 = vadd.f32 %v2072_v21, %v2071_v9  ;;  %v783_v50 = vmax.f32 %v675_v38, %v767_v56 }
  0xf8   : > { %v854_v60 = vadd.f32 %v804_v33, %v774_v3  ;;  %v859_v48 = vadd.f32 %v824_v24, %v779_v53  ;;  %v672_v61 = vmax.f32 %v564_v10, %v656_v63  ;;  %v677_v41 = vmax.f32 %v569_v59, %v661_v39  ;;  %v2074_v3 = vld [vmem:[#allocation2_spill] sm:$0xff]  ;;  %v2076_v24 = vld [vmem:[#allocation16_spill] sm:$0xff] }
  0xf9   : > { %v566_v35 = vmax.f32 %v1829_v22, %v1835_v46  ;;  %v588_v40 = vmul.f32 %v2074_v3, %v2073_v44  ;;  %v750_v30 = vmul.f32 %v2038_v1, %v1738_v2  ;;  %v644_v0 = vmul.f32 %v2035_v52, %v1763_v45  ;;  %v2077_v22 = vld [vmem:[#allocation18_spill] sm:$0xff] }
  0xfa   : > { %870 = vst [vmem:[%s1801_s23 + $0x20] sm:$0xff] %v854_v60  ;;  %875 = vst [vmem:[%s1801_s23 + $0x48] sm:$0xff] %v859_v48  ;;  %v764_v8 = vadd.f32 %v1796_v32, %v2075_v29  ;;  %v769_v33 = vadd.f32 %v753_v25, %v733_v19  ;;  %v658_v4 = vadd.f32 %v642_v17, %v2076_v24  ;;  %v2080_v60 = vld [vmem:[#allocation30_spill] sm:$0xff] }
  0xfb   : > { %v812_v37 = vpop.permute.xlu1 %811  ;;  %v832_v28 = vpop.permute.xlu0 %831  ;;  %v624_v46 = vadd.f32 %v2077_v22, %v588_v40  ;;  %v716_v23 = vmul.f32 %v2079_v18, %v2078_v5  ;;  %v2081_v2 = vld [vmem:[#allocation22_spill] sm:$0xff]  ;;  %v568_v27 = vmax.f32 %v460_v58, %v552_v12  ;;  %v696_v34 = vmul.f32 %v2082_v14, %v2073_v44 }
  0xfc   : > { %v856_v51 = vadd.f32 %v812_v37, %v776_v20  ;;  %v861_v47 = vadd.f32 %v832_v28, %v781_v31  ;;  %v730_v48 = vadd.f32 %v2081_v2, %v2080_v60  ;;  %v780_v52 = vmax.f32 %v672_v61, %v764_v8 }
  0xfd   : > { %v785_v55 = vmax.f32 %v677_v41, %v769_v33  ;;  %v674_v32 = vmax.f32 %v566_v35, %v658_v4  ;;  %v752_v62 = vmul.f32 %v2038_v1, %v1763_v45  ;;  %v660_v10 = vadd.f32 %v644_v0, %v624_v46 }
  0xfe   : > { %872 = vst [vmem:[%s1801_s23 + $0x30] sm:$0xff] %v856_v51  ;;  %877 = vst [vmem:[%s1801_s23 + $0x58] sm:$0xff] %v861_v47  ;;  %v766_v38 = vadd.f32 %v750_v30, %v730_v48  ;;  %v732_v25 = vadd.f32 %v716_v23, %v696_v34 }
  0xff   : > { %v820_v7 = vpop.permute.xlu1 %819  ;;  %v840_v53 = vpop.permute.xlu0 %839  ;;  %v676_v17 = vmax.f32 %v568_v27, %v660_v10 }
 0x100   : > { %v858_v57 = vadd.f32 %v820_v7, %v778_v54  ;;  %v863_v42 = vadd.f32 %v840_v53, %v783_v50  ;;  %v782_v59 = vmax.f32 %v674_v32, %v766_v38  ;;  %v768_v26 = vadd.f32 %v752_v62, %v732_v25 }
 0x102   : > { %874 = vst [vmem:[%s1801_s23 + $0x40] sm:$0xff] %v858_v57  ;;  %879 = vst [vmem:[%s1801_s23 + $0x68] sm:$0xff] %v863_v42  ;;  %v784_v16 = vmax.f32 %v676_v17, %v768_v26 }
 0x103   : > { %v828_v11 = vpop.permute.xlu1 %827  ;;  %v848_v20 = vpop.permute.xlu0 %847 }
 0x104   : > { %v860_v43 = vadd.f32 %v828_v11, %v780_v52  ;;  %v865_v31 = vadd.f32 %v848_v20, %v785_v55 }
 0x106   : > { %876 = vst [vmem:[%s1801_s23 + $0x50] sm:$0xff] %v860_v43  ;;  %881 = vst [vmem:[%s1801_s23 + $0x78] sm:$0xff] %v865_v31 }
 0x107   : > { %v836_v37 = vpop.permute.xlu1 %835 }
 0x108   : > { %v862_v28 = vadd.f32 %v836_v37, %v782_v59 }
 0x10a   : > { %878 = vst [vmem:[%s1801_s23 + $0x60] sm:$0xff] %v862_v28 }
 0x10b   : > { %v844_v6 = vpop.permute.xlu1 %843 }
 0x10c   : > { %v864_v56 = vadd.f32 %v844_v6, %v784_v16 }
 0x10e   : > { %880 = vst [vmem:[%s1801_s23 + $0x70] sm:$0xff] %v864_v56 }
 0x10f PF: > { %s12_s9 = sadd.s32 1, %s976_s9  }
 0x110   : > { %p9_p4 = scmp.ge.s32.totalorder %s12_s9, 4  }
 0x112   :  { %11 = sbr.rel (!%p9_p4) target bundleno = 1 (0x1), region = 58 }

</bundles_post_ra>
